<compile_context>
chip_gen: v7x
topology: tpu7x:2x2x1
jax: 0.10.0
libtpu: 0.0.40
codegen_flags: <defaults>
</compile_context>

<pallas_src>
import jax
import jax.numpy as jnp
from jax.experimental import pallas as pl
from jax.experimental.pallas import tpu as pltpu


def _normalize_and_scale(w_ref, x):
    """L2-normalize rows of x (TN, D) and scale by the modality's softmax weight."""
    m = pl.program_id(0)
    xf = x.astype(jnp.float32)
    sq = jnp.sum(xf * xf, axis=-1, keepdims=True)               # (TN, 1)
    # max(sqrt(sq), 1e-12) == sqrt(max(sq, 1e-24)); rsqrt runs on the EUP slot.
    scale = w_ref[m] * jax.lax.rsqrt(jnp.maximum(sq, 1e-24))    # (TN, 1)
    return xf * scale


def _fusion_kernel_fused(w_ref, emb_ref, out_ref):
    # w_ref  : SMEM (M,) f32     -- softmax(weight) (scalar prefetch)
    # emb_ref: VMEM (1, TN, D)   -- row tile of modality m
    # out_ref: VMEM (TN, D)      -- column slice [m*D, (m+1)*D) of the (N, M*D) output
    out_ref[...] = _normalize_and_scale(w_ref, emb_ref[0]).astype(out_ref.dtype)


def _fusion_kernel_stacked(w_ref, emb_ref, out_ref):
    # Fallback layout: out_ref is VMEM (1, TN, D) inside an (M, N, D) output.
    out_ref[0] = _normalize_and_scale(w_ref, emb_ref[0]).astype(out_ref.dtype)


def _pick_tn(N, D, itemsize, vmem_budget_bytes=16 * 1024 * 1024):
    """Largest row tile TN such that 2 in-bufs + 2 out-bufs fit the VMEM budget,
    TN is a multiple of 8 (or equals N), and TN divides N."""
    max_rows = max(8, vmem_budget_bytes // (4 * D * itemsize))
    if N <= max_rows:
        return N
    tn = (max_rows // 8) * 8
    while tn > 8 and N % tn != 0:
        tn -= 8
    if tn < 8 or N % tn != 0:
        tn = N  # no clean divisor -> single slab per modality
    return tn


def multimodal_fusion(embs_stacked, weight):
    """embs_stacked: (M, N, D), weight: (M, 1) -> joint embedding (N, M*D)."""
    M, N, D = embs_stacked.shape
    dtype = embs_stacked.dtype
    itemsize = jnp.dtype(dtype).itemsize

    # Tiny parameter-side softmax over the M modality weights (glue, not hot path).
    weight_norm = jax.nn.softmax(weight[:, 0].astype(jnp.float32), axis=0)  # (M,)

    TN = _pick_tn(N, D, itemsize)
    n_tiles = N // TN

    cost = pl.CostEstimate(
        flops=3 * M * N * D,
        transcendentals=M * N,
        bytes_accessed=2 * M * N * D * itemsize,
    )
    cparams = pltpu.CompilerParams(dimension_semantics=("parallel", "parallel"))

    if D % 128 == 0:
        # Fused-concat, lane-dense output path: write each modality's row tile
        # straight into its column slice of the (N, M*D) result.
        return pl.pallas_call(
            _fusion_kernel_fused,
            out_shape=jax.ShapeDtypeStruct((N, M * D), dtype),
            grid_spec=pltpu.PrefetchScalarGridSpec(
                num_scalar_prefetch=1,
                grid=(M, n_tiles),
                in_specs=[pl.BlockSpec((1, TN, D), lambda m, n, w: (m, n, 0))],
                out_specs=pl.BlockSpec((TN, D), lambda m, n, w: (n, m)),
            ),
            compiler_params=cparams,
            cost_estimate=cost,
        )(weight_norm, embs_stacked)

    # Fallback for D not a multiple of 128: keep (M, N, D) blocks (last block dim
    # equals the full array dim, so lowering is clean) and fold the concat with a
    # wrapper transpose/reshape.
    out = pl.pallas_call(
        _fusion_kernel_stacked,
        out_shape=jax.ShapeDtypeStruct((M, N, D), dtype),
        grid_spec=pltpu.PrefetchScalarGridSpec(
            num_scalar_prefetch=1,
            grid=(M, n_tiles),
            in_specs=[pl.BlockSpec((1, TN, D), lambda m, n, w: (m, n, 0))],
            out_specs=pl.BlockSpec((1, TN, D), lambda m, n, w: (m, n, 0)),
        ),
        compiler_params=cparams,
        cost_estimate=cost,
    )(weight_norm, embs_stacked)
    # torch.cat(embs, dim=1): (M, N, D) -> (N, M, D) -> (N, M*D)
    return jnp.transpose(out, (1, 0, 2)).reshape(N, M * D)


def _reference(embs_stacked, weight):
    weight_norm = jax.nn.softmax(weight[:, 0], axis=0)
    norms = jnp.maximum(
        jnp.sqrt(jnp.sum(embs_stacked * embs_stacked, axis=-1, keepdims=True)), 1e-12
    )
    scaled = weight_norm[:, None, None] * embs_stacked / norms
    M, N, D = embs_stacked.shape
    return jnp.transpose(scaled, (1, 0, 2)).reshape(N, M * D)


if __name__ == "__main__":
    modal_num = 3    # M
    batch = 16       # N (rows of each embedding)
    hidden = 128     # D (feature dim; lane-aligned -> fused output path)

    key = jax.random.PRNGKey(0)
    keys = jax.random.split(key, modal_num)
    embs = [
        jax.random.normal(keys[i], (batch, hidden), dtype=jnp.float32)
        for i in range(modal_num)
    ]
    embs_stacked = jnp.stack(embs, axis=0)                      # (M, N, D)

    # nn.Parameter(torch.ones((modal_num, 1))) — deterministic init.
    weight = jnp.ones((modal_num, 1), dtype=jnp.float32)

    joint = multimodal_fusion(embs_stacked, weight)
    jax.block_until_ready(joint)

    ref = _reference(embs_stacked, weight)
    assert joint.shape == (batch, modal_num * hidden)
    assert jnp.allclose(joint, ref, atol=1e-5, rtol=1e-5)

    print("KERNEL_OK")
</pallas_src>

<mosaic_0001>
module attributes {stable_mosaic.version = 11 : i64} {
  func.func @_fusion_kernel_fused(%arg0: i32, %arg1: i32, %arg2: memref<3xf32, #tpu.memory_space<smem>>, %arg3: memref<1x16x128xf32, #tpu.memory_space<vmem>>, %arg4: memref<16x128xf32, #tpu.memory_space<vmem>>) attributes {dimension_semantics = [#tpu.dimension_semantics<parallel>, #tpu.dimension_semantics<parallel>], iteration_bounds = array<i64: 3, 1>, scalar_prefetch = 1 : i64, scratch_operands = 0 : i64, tpu.core_type = #tpu.core_type<tc>, window_params = [{transform_indices = @transform_0, window_bounds = array<i64: 1, 16, 128>}, {transform_indices = @transform_1, window_bounds = array<i64: 16, 128>}]} {
    %c0 = arith.constant 0 : index
    %c0_0 = arith.constant 0 : index
    %c0_1 = arith.constant 0 : index
    %0 = vector.load %arg3[%c0, %c0_0, %c0_1] : memref<1x16x128xf32, #tpu.memory_space<vmem>>, vector<1x16x128xf32>
    %1 = vector.shape_cast %0 : vector<1x16x128xf32> to vector<16x128xf32>
    %2 = arith.mulf %1, %1 : vector<16x128xf32>
    %cst = arith.constant dense<0.000000e+00> : vector<16xf32>
    %3 = vector.multi_reduction <add>, %2, %cst [1] : vector<16x128xf32> to vector<16xf32>
    %4 = vector.shape_cast %3 : vector<16xf32> to vector<16x1xf32>
    %5 = arith.index_cast %arg0 : i32 to index
    %6 = memref.load %arg2[%5] : memref<3xf32, #tpu.memory_space<smem>>
    %cst_2 = arith.constant 1.000000e-24 : f32
    %7 = vector.broadcast %cst_2 : f32 to vector<16x1xf32>
    %8 = arith.maximumf %4, %7 : vector<16x1xf32>
    %9 = math.rsqrt %8 : vector<16x1xf32>
    %10 = vector.broadcast %6 : f32 to vector<16x1xf32>
    %11 = arith.mulf %10, %9 : vector<16x1xf32>
    %12 = vector.broadcast %11 : vector<16x1xf32> to vector<16x128xf32>
    %13 = arith.mulf %1, %12 : vector<16x128xf32>
    %c0_3 = arith.constant 0 : index
    %c0_4 = arith.constant 0 : index
    %14 = vector.load %arg4[%c0_3, %c0_4] : memref<16x128xf32, #tpu.memory_space<vmem>>, vector<16x128xf32>
    tpu.vector_store %arg4[%c0_3, %c0_4], %13 {strides = array<i32>} : memref<16x128xf32, #tpu.memory_space<vmem>>, vector<16x128xf32>,
    return
  }
  func.func @transform_0(%arg0: i32, %arg1: i32, %arg2: memref<3xf32, #tpu.memory_space<smem>>) -> (i32, i32, i32) {
    %c0_i32 = arith.constant 0 : i32
    %c0_i32_0 = arith.constant 0 : i32
    return %arg0, %arg1, %c0_i32 : i32, i32, i32
  }
  func.func @transform_1(%arg0: i32, %arg1: i32, %arg2: memref<3xf32, #tpu.memory_space<smem>>) -> (i32, i32) {
    %c0_i32 = arith.constant 0 : i32
    return %arg1, %arg0 : i32, i32
  }
}

</mosaic_0001>

<bundles_post_ra>
// kernel: tpu_custom_call.1
= control target key start
LH: loop header
LB: loop body
LE: loop exit
PB: predicated region body
PF: predicated region fallthrough
CT: control target
= control target key end

     0   :  { %s704_s0 = inlined_call_operand.hbm [shape: f32[3], index: 0, kind: input, shape index: {}]   ;;  %s705_s1 = inlined_call_operand.hbm [shape: f32[3,16,128], index: 1, kind: input, shape index: {}]   ;;  %s706_s2 = inlined_call_operand.hbm [shape: f32[16,384], index: 2, kind: output, shape index: {}]  }
   0x1   :  { %s369_s11 = scalar_lea.hbm %s704_s0, 16 }
   0x2   :  { %p370_p0 = scmp.ne.s32.totalorder %s704_s0, %s369_s11  ;;  %p373_p1 = scmp.lt.u32.totalorder %s369_s11, %s704_s0 }
   0x4   :  { %p375_p2 = pnand %p373_p1, %p370_p0 }
   0x6   :  { %378 = shalt.err (!%p375_p2)  }
   0x7   :  { %s495_s16 = smov [#allocation3]  }
   0x8   :  { %8 = dma.hbm_to_smem %s704_s0, 16, %s495_s16, [#allocation2] }
   0x9   :  { %461 = dma.done.wait [#allocation2], 16 }
   0xa   :  { %462 = vsyncadd [#allocation2], 4294967280 }
   0xb   :  { %10 = sfence }
   0xc   :  { %11 = vsyncpa [#allocation5], 0 }
   0xd   :  { %13 = vsyncpa [#allocation5 + $0x1], 0 }
   0xe   :  { %14 = vsyncpa [#allocation6], 0 }
   0xf   :  { %16 = vsyncpa [#allocation6 + $0x1], 0  ;;  %s530_s19 = smov 0   ;;  %s532_s20 = smov 0  }
  0x10   :  { %s534_s21 = smov 0   ;;  %s536_s22 = smov 0  }
  0x11   :  { %s538_s23 = smov 0   ;;  %s540_s24 = smov 0  }
  0x12 LB: > { %s282_s0 = sadd.s32 4294967295, %s493_s24   ;;  %s283_s25 = sadd.s32 4294967294, %s493_s24   ;;  %s493_s24 = sphi %s540_s24, %s22_s24   ;;  %s489_s23 = sphi %s538_s23, %s720_s23   ;;  %s485_s22 = sphi %s536_s22, %s719_s22   ;;  %s481_s21 = sphi %s534_s21, %s718_s21   ;;  %s477_s20 = sphi %s532_s20, %s717_s20   ;;  %s473_s19 = sphi %s530_s19, %s716_s19  }
  0x13   : > { %s34_s26 = sadd.s32 1, %s489_s23  ;;  %s43_s27 = sadd.s32 1, %s481_s21 }
  0x14   : > { %p36_p3 = scmp.ge.s32.totalorder %s34_s26, 3  ;;  %p50_p4 = scmp.ne.s32.totalorder %s481_s21, %s477_s20 }
  0x15   : > { %p51_p5 = scmp.eq.s32.totalorder %s493_s24, 0  ;;  %p56_p6 = scmp.ne.s32.totalorder %s477_s20, %s473_s19 }
  0x16   : > { %s722_s26 = smov (%p36_p3, %s34_s26), 0  ;;  %p57_p8 = scmp.eq.s32.totalorder %s282_s0, 0 }
  0x17   : > { %p571_p7 = por %p51_p5, %p50_p4  ;;  %s38_s29 = ssub.s32 %s489_s23, %s722_s26 }
  0x18   : > { %p82_p9 = scmp.eq.s32.totalorder %s282_s0, 2  ;;  %p41_p10 = scmp.eq.s32.totalorder %s38_s29, 0 }
  0x19   : > { %p577_p11 = por %p57_p8, %p56_p6  ;;  %p88_p13 = scmp.eq.s32.totalorder %s283_s25, 2 }
  0x1a   : > { %p581_p12 = por %p82_p9, %p50_p4  ;;  %p309_p1 = scmp.lt.s32.totalorder %s493_s24, 3 }
  0x1b   : > { %s586_s4 = scalar_select %p41_p10, %s481_s21, %s43_s27  }
  0x1c   : > { %s710_s3 = scalar_select %p581_p12, 1, 0 }
  0x1d   : > { %p588_p0 = por %p88_p13, %p56_p6  ;;  %s108_s6 = sand.u32 1, %s481_s21  }
  0x1e   : > { %s286_s7 = sshll.u32 %s108_s6, 4  ;;  %s296_s8 = sshll.u32 %s489_s23, 8 }
  0x1f   : > { %s711_s5 = scalar_select %p588_p0, 1, 0 }
  0x20   : > { %s598_s11 = scalar_lea.hbm %s705_s1, %s296_s8  ;;  %s112_s12 = scalar_lea.vmem [#allocation4], %s286_s7 }
  0x21   : > { %s121_s13 = sshll.u32 %s112_s12, 4  ;;  %p604_p2 = pnand %p309_p1, %p571_p7  ;;  %s600_s13 = int_to_ptr.vmem [resolvable:$true] %s121_s13 }
  0x22   : > { %s609_s15 = scalar_lea.sflag [#allocation5], %s108_s6  ;;  %s379_s16 = scalar_lea.hbm %s598_s11, 256 }
  0x23   : > { %p380_p4 = scmp.ne.s32.totalorder %s598_s11, %s379_s16  ;;  %p381_p5 = pneg %p604_p2 }
  0x24   : > { %s384_s0 = scalar_lea.hbm %s705_s1, 768  ;;  %p385_p7 = scmp.lt.u32.totalorder %s598_s11, %s705_s1 }
  0x25   : > { %p382_p6 = pnand %p381_p5, %p380_p4  ;;  %p386_p9 = scmp.lt.u32.totalorder %s384_s0, %s379_s16 }
  0x26   : > { %p388_p13 = scmp.lt.u32.totalorder %s379_s16, %s598_s11 }
  0x27   : > { %p383_p8 = pneg %p382_p6  ;;  %p387_p10 = por %p386_p9, %p385_p7 }
  0x29   : > { %p389_p1 = por %p388_p13, %p387_p10 }
  0x2b   : > { %p390_p3 = pnand %p389_p1, %p383_p8 }
  0x2d   : > { %393 = shalt.err (!%p390_p3)
}
  0x2e   : > { %s394_s28 = scalar_lea.vmem %s600_s13, 256  ;;  %s496_s29 = smov [#allocation4]  }
  0x2f   : > { %p395_p4 = scmp.ne.s32.totalorder %s600_s13, %s394_s28  ;;  %s399_s6 = sshll.u32 %s496_s29, 4  ;;  %s400_s6 = int_to_ptr.vmem [resolvable:$false] %s399_s6 }
  0x30   : > { %s401_s7 = scalar_lea.vmem %s400_s6, 512  ;;  %p402_p12 = scmp.lt.s32.totalorder %s600_s13, %s400_s6 }
  0x31   : > { %p397_p6 = pnand %p395_p4, %p381_p5  ;;  %p403_p7 = scmp.lt.s32.totalorder %s401_s7, %s394_s28 }
  0x33   : > { %p398_p0 = pneg %p397_p6  ;;  %p404_p9 = por %p403_p7, %p402_p12 }
  0x35   : > { %p405_p10 = pnand %p404_p9, %p398_p0 }
  0x37   : > { %408 = shalt.err (!%p405_p10)
}
  0x38   : > { %s497_s8 = smov 128   ;;  %s498_s9 = smov 8  }
  0x39   : > { %304 = dma.hbm_to_vmem [thread:$0]  (!%p604_p2), %s598_s11, 256, %s600_s13, %s609_s15, %s497_s8, %s497_s8, %s498_s9  }
  0x3a   : > { %p129_p3 = scmp.lt.s32.totalorder %s493_s24, 4  ;;  %p713_p5 = scmp.ge.s32.totalorder %s493_s24, 1 }
  0x3c   : > { %p130_p8 = pnand %p713_p5, %p129_p3 }
  0x3d   : > { %s641_s10 = sand.u32 (!%p130_p8), 1, %s477_s20  }
  0x3e   : > { %133 = sbr.rel (%p130_p8) target bundleno = 252 (0xfc), region = 24  ;;  %s290_s12 = sshll.u32 (!%p130_p8), %s641_s10, 4 }
  0x3f   : > { %s136_s16 = scalar_lea.sflag (!%p130_p8), [#allocation5], %s641_s10  ;;  %s139_s17 = scalar_lea.vmem (!%p130_p8), [#allocation4], %s290_s12 }
  0x45   : > { %464 = dma.done.wait (%p577_p11), %s136_s16, 256  }
  0x46   : > { %466 = vsyncadd (%p577_p11), %s136_s16, 4294967040  ;;  %v160_v0 = vld [vmem:[%s139_s17] sm:$0xff]  ;;  %v161_v1 = vld [vmem:[%s139_s17 + $0x8] sm:$0xff]  ;;  %s168_s11 = sld [smem:[#allocation3 + %s485_s22]]  ;;  %s293_s30 = sshll.u32 %s485_s22, 7 }
  0x47   : > { %v162_v2 = vmul.f32 %v160_v0, %v160_v0  ;;  %v163_v3 = vmul.f32 %v161_v1, %v161_v1  ;;  %s157_s13 = scalar_lea.vmem [#allocation7], %s290_s12  ;;  %s654_s0 = scalar_lea.hbm %s706_s2, %s293_s30 }
  0x48   : > { %s196_s14 = sshll.u32 %s157_s13, 4  ;;  %s181_s25 = scalar_lea.sflag [#allocation6], %s641_s10  ;;  %s656_s14 = int_to_ptr.vmem [resolvable:$true] %s196_s14 }
  0x49   : > { %164 = vadd.xlane.f32.xlu0 %v162_v2  ;;  %s409_s22 = scalar_lea.vmem %s656_s14, 256  ;;  %p714_p12 = scmp.ne.s32.totalorder %s710_s3, 0 }
  0x4a   : > { %p410_p11 = scmp.ne.s32.totalorder %s656_s14, %s409_s22  ;;  %s499_s27 = smov [#allocation7]  }
  0x4b   : > { %s413_s28 = sshll.u32 %s499_s27, 4  ;;  %s414_s28 = int_to_ptr.vmem [resolvable:$false] %s413_s28 }
  0x4c   : > { %v173_v8 = vstv %s168_s11  ;;  %p411_p0 = pnand %p410_p11, %p714_p12  ;;  %s415_s29 = scalar_lea.vmem %s414_s28, 512 }
  0x4d   : > { %166 = vadd.xlane.f32.xlu0 %v163_v3  ;;  %p416_p13 = scmp.lt.s32.totalorder %s656_s14, %s414_s28  ;;  %p417_p1 = scmp.lt.s32.totalorder %s415_s29, %s409_s22 }
  0x4e   : > { %p412_p2 = pneg %p411_p0 }
  0x4f   : > { %p418_p4 = por %p417_p1, %p416_p13 }
  0x51   : > { %p419_p6 = pnand %p418_p4, %p412_p2 }
  0xd6   : > { %v165_v4 = vpop.xlane.xlu0 %164 }
  0xd7   : > { %v169_v5 = vmax.f32 %v165_v4, 1e-24 }
  0xd9   : > { %365 = vrsqrt.f32 %v169_v5 }
  0xda   : > { %v167_v6 = vpop.xlane.xlu0 %166 }
  0xdb   : > { %v170_v7 = vmax.f32 %v167_v6, 1e-24 }
  0xdd   : > { %367 = vrsqrt.f32 %v170_v7 }
  0xe3   : > { %v366_v9 = vpop.eup %365 }
  0xe4   : > { %v174_v10 = vmul.f32 %v366_v9, %v173_v8 }
  0xe6   : > { %v176_v11 = vmul.f32 %v174_v10, %v160_v0 }
  0xe7   : > { %v368_v12 = vpop.eup %367 }
  0xe8   : > { %178 = vst [vmem:[%s157_s13] sm:$0xff] %v176_v11  ;;  %v175_v13 = vmul.f32 %v368_v12, %v173_v8 }
  0xea   : > { %v177_v14 = vmul.f32 %v175_v13, %v161_v1 }
  0xec   : > { %179 = vst [vmem:[%s157_s13 + $0x8] sm:$0xff] %v177_v14 }
  0xed   : > { %422 = shalt.err (!%p419_p6)
}
  0xee   : > { %s423_s6 = scalar_lea.hbm %s654_s0, 256  ;;  %s427_s9 = scalar_lea.hbm %s706_s2, 768 }
  0xef   : > { %p424_p7 = scmp.ne.s32.totalorder %s654_s0, %s423_s6  ;;  %p428_p3 = scmp.lt.u32.totalorder %s654_s0, %s706_s2 }
  0xf0   : > { %p429_p5 = scmp.lt.u32.totalorder %s427_s9, %s423_s6  ;;  %p431_p11 = scmp.lt.u32.totalorder %s423_s6, %s654_s0 }
  0xf1   : > { %p425_p9 = pnand %p424_p7, %p714_p12 }
  0xf2   : > { %p430_p8 = por %p429_p5, %p428_p3 }
  0xf3   : > { %p426_p10 = pneg %p425_p9 }
  0xf4   : > { %p432_p0 = por %p431_p11, %p430_p8 }
  0xf6   : > { %p433_p2 = pnand %p432_p0, %p426_p10 }
  0xf8   : > { %436 = shalt.err (!%p433_p2)
}
  0xf9   : > { %s500_s17 = smov 128   ;;  %s501_s11 = smov 384  }
  0xfa   : > { %s502_s30 = smov 8  }
  0xfb   : > { %299 = dma.vmem_to_hbm [thread:$0]  (%p714_p12), %s656_s14, 256, %s654_s0, %s181_s25, %s500_s17, %s501_s11, %s502_s30  }
  0xfc PF: > { %p310_p13 = scmp.ge.s32.totalorder %s493_s24, 2  ;;  %s211_s13 = sand.u32 1, %s473_s19  }
  0xfd   : > { %p715_p1 = scmp.ne.s32.totalorder %s711_s5, 0  ;;  %s212_s15 = scalar_lea.sflag [#allocation6], %s211_s13 }
  0xff   : > { %p306_p4 = pnand %p310_p13, %p715_p1 }
 0x101   : > { %468 = dma.done.wait (!%p306_p4), %s212_s15, 256  }
 0x102   : > { %470 = vsyncadd (!%p306_p4), %s212_s15, 4294967040  ;;  %s22_s24 = sadd.s32 1, %s493_s24   ;;  %s716_s19 = smov %s477_s20 }
 0x103   : > { %p19_p6 = scmp.ge.s32.totalorder %s22_s24, 5   ;;  %s717_s20 = smov %s481_s21 }
 0x104   : > { %s718_s21 = smov %s586_s4  ;;  %s719_s22 = smov %s489_s23 }
 0x105   : > { %s720_s23 = smov %s722_s26  ;;  %21 = sbr.rel (!%p19_p6) target bundleno = 18 (0x12), region = 69 }
 0x10c   :  { %217 = vsyncpa [#allocation5], 1 }
 0x10d   :  { %219 = vsyncpa [#allocation5 + $0x1], 1 }
 0x10e   :  { %220 = vsyncpa [#allocation6], 1 }
 0x10f   :  { %222 = vsyncpa [#allocation6 + $0x1], 1 }

</bundles_post_ra>
